<compile_context>
chip_gen: v6e
topology: v6e:2x2x1
jax: 0.10.0
libtpu: 0.0.40
codegen_flags: <defaults>
</compile_context>

<pallas_src>
import functools

import jax
import jax.numpy as jnp
from jax.experimental import pallas as pl
from jax.experimental.pallas import tpu as pltpu

_PHI_OUT = 30  # nn.Linear(input_dim, 30) in the PyTorch module


# ---------------------------------------------------------------------------
# Pallas kernel: one batch block per grid step
# ---------------------------------------------------------------------------
def _sum_pooling_kernel(num_layers, tb, set_len, x_ref, w0_ref, b0_ref, *rest):
    # rest = ([w_rho_i, b_rho_i] * num_layers, wf_ref, bf_ref, out_ref)
    out_ref = rest[-1]
    wf_ref, bf_ref = rest[-3], rest[-2]
    rho_refs = rest[:-3]

    # phi: Linear(D -> 30) + tanh on the flattened (tb*S, D) rows (MXU + EUP).
    x = x_ref[...].astype(jnp.float32)                               # (tb*S, D)
    h = jnp.tanh(
        jnp.dot(x, w0_ref[...], preferred_element_type=jnp.float32) + b0_ref[...]
    )                                                                # (tb*S, 30)

    # Sum pooling over the set dim: the reshape only splits the leading
    # (sublane) axis -- with S a multiple of the 8-row sublane tile (or a
    # single full-array block) it is layout-preserving -- followed by a
    # cross-sublane reduce on the XLU (separate slot from the VPU/MXU).
    h3 = h.reshape(tb, set_len, h.shape[-1])                         # (tb, S, 30)
    r = jnp.sum(h3, axis=1)                                          # (tb, 30)

    # rho MLP: num_layers x (Linear + Tanh).
    for i in range(num_layers):
        w = rho_refs[2 * i][...]
        b = rho_refs[2 * i + 1][...]
        r = jnp.tanh(jnp.dot(r, w, preferred_element_type=jnp.float32) + b)

    # Final Linear(N -> 1) as a trans-B matmul -> lane-dense (1, tb) output.
    out = jnp.einsum(
        "on,bn->ob", wf_ref[...], r, preferred_element_type=jnp.float32
    ) + bf_ref[...]
    out_ref[...] = out.astype(out_ref.dtype)


# ---------------------------------------------------------------------------
# Parameter init (matches nn.init.xavier_uniform_ + zero bias)
# ---------------------------------------------------------------------------
def _xavier_uniform(key, shape, fan_in, fan_out):
    bound = (6.0 / (fan_in + fan_out)) ** 0.5
    return jax.random.uniform(
        key, shape, minval=-bound, maxval=bound, dtype=jnp.float32
    )


def init_sum_pooling_params(key, input_dim, num_layers, num_neurons):
    params = []
    key, k0 = jax.random.split(key)
    # phi Linear(input_dim, 30): stored as (in, out) so the kernel does x @ W.
    params.append(_xavier_uniform(k0, (input_dim, _PHI_OUT), input_dim, _PHI_OUT))
    params.append(jnp.zeros((1, _PHI_OUT), jnp.float32))
    in_dim = _PHI_OUT
    for _ in range(num_layers):
        key, ki = jax.random.split(key)
        params.append(_xavier_uniform(ki, (in_dim, num_neurons), in_dim, num_neurons))
        params.append(jnp.zeros((1, num_neurons), jnp.float32))
        in_dim = num_neurons
    key, kf = jax.random.split(key)
    final_in = _PHI_OUT if num_layers == 0 else num_neurons
    # Final layer kept in torch (out, in) = (1, final_in) layout -> used as a row.
    params.append(_xavier_uniform(kf, (1, final_in), final_in, 1))
    params.append(jnp.zeros((1, 1), jnp.float32))
    return params


# ---------------------------------------------------------------------------
# Wrapper around pallas_call
# ---------------------------------------------------------------------------
def _pick_tb(B, S, vmem_budget_bytes):
    """Largest batch tile that fits the budget; multi-block tiles are x128.

    The budget assumes the worst case where (rows, <128) blocks/intermediates
    are lane-padded to 128 in VMEM: 2 buffers for the pipelined x block plus
    the f32 h intermediate, plus a small allowance for the pooled activations.
    """
    lane = 128

    def block_bytes(tb):
        rows = tb * S
        return (3 * rows + 4 * tb) * lane * 4

    if block_bytes(B) <= vmem_budget_bytes:
        return B                         # single block covers the whole batch
    tb = 128
    while (tb + 128) < B and block_bytes(tb + 128) <= vmem_budget_bytes:
        tb += 128
    return tb


def sum_pooling_forward(x, params, num_layers, *, tb=None,
                        vmem_budget_bytes=16 * 1024 * 1024):
    B, S, D = x.shape
    if tb is None:
        tb = _pick_tb(B, S, vmem_budget_bytes)

    num_blocks = pl.cdiv(B, tb)
    b_pad = num_blocks * tb
    assert num_blocks == 1 or tb % 128 == 0, (
        "tb must cover the batch in a single block or be a multiple of 128 "
        "(lane-dense output block / (8,.)-aligned x rows)")

    # Layout plumbing in the wrapper (free in XLA): pad batch, flatten (B,S,D)
    # -> (B*S, D) so the phi matmul is one big MXU op per block.
    if b_pad != B:
        x = jnp.pad(x, ((0, b_pad - B), (0, 0), (0, 0)))
    x_flat = x.reshape(b_pad * S, D)

    kernel = functools.partial(_sum_pooling_kernel, num_layers, tb, S)

    in_specs = (
        [pl.BlockSpec((tb * S, D), lambda i: (i, 0))]                 # pipelined x block
        + [pl.BlockSpec(p.shape, lambda i: (0, 0)) for p in params]   # tiny, grid-invariant
    )
    out_specs = pl.BlockSpec((1, tb), lambda i: (0, i))               # lane-dense output block

    # Advisory cost estimate for XLA's scheduler.
    hidden = _PHI_OUT
    flops = 2 * b_pad * S * D * hidden + b_pad * S * hidden          # phi matmul + pool adds
    transcendentals = b_pad * S * hidden
    fan_in = hidden
    for i in range(num_layers):
        fan_out = params[2 + 2 * i].shape[1]
        flops += 2 * b_pad * fan_in * fan_out
        transcendentals += b_pad * fan_out
        fan_in = fan_out
    flops += 2 * b_pad * fan_in                                      # final Linear(N -> 1)
    bytes_accessed = int(
        x_flat.size * 4 + sum(int(p.size) * 4 for p in params) + b_pad * 4)

    out_lane = pl.pallas_call(
        kernel,
        out_shape=jax.ShapeDtypeStruct((1, b_pad), jnp.float32),
        grid=(num_blocks,),
        in_specs=in_specs,
        out_specs=out_specs,
        compiler_params=pltpu.CompilerParams(
            dimension_semantics=("parallel",)),
        cost_estimate=pl.CostEstimate(
            flops=int(flops),
            transcendentals=int(transcendentals),
            bytes_accessed=bytes_accessed),
    )(x_flat, *params)

    # (1, B_pad) lane-dense slab -> (B, 1) to match the PyTorch module output.
    return out_lane[0, :B][:, None]


# ---------------------------------------------------------------------------
# Pure-JAX reference for correctness checks
# ---------------------------------------------------------------------------
def sum_pooling_ref(x, params, num_layers):
    w0, b0 = params[0], params[1]
    h = jnp.tanh(jnp.einsum("bsd,do->bso", x, w0) + b0[None])
    r = jnp.sum(h, axis=1)
    for i in range(num_layers):
        w, b = params[2 + 2 * i], params[3 + 2 * i]
        r = jnp.tanh(r @ w + b)
    wf, bf = params[-2], params[-1]            # wf: (1, final_in), bf: (1, 1)
    return r @ wf.T + bf


if __name__ == "__main__":
    # SumPoolingModel(vocab_size=6, input_dim=3, model='mlp',
    #                 num_layers=3, num_neurons=30, device=...)
    input_dim, num_layers, num_neurons = 3, 3, 30

    key = jax.random.PRNGKey(0)
    key, kx1, kx2, kp = jax.random.split(key, 4)
    params = init_sum_pooling_params(kp, input_dim, num_layers, num_neurons)

    # 1) Small shape: single batch block (grid=(1,), all blocks = full arrays).
    x_small = jax.random.normal(kx1, (2, 8, input_dim), dtype=jnp.float32)
    out_small = jax.block_until_ready(
        sum_pooling_forward(x_small, params, num_layers))
    ref_small = sum_pooling_ref(x_small, params, num_layers)
    assert out_small.shape == (2, 1), out_small.shape
    assert jnp.allclose(out_small, ref_small, atol=1e-4, rtol=1e-4), (
        out_small, ref_small)

    # 2) Larger batch: pipelined batch grid (tb=128), batch padding (200 -> 256)
    #    and the lane-dense (1, B) output path.
    x_big = jax.random.normal(kx2, (200, 8, input_dim), dtype=jnp.float32)
    out_big = jax.block_until_ready(
        sum_pooling_forward(x_big, params, num_layers, tb=128))
    ref_big = sum_pooling_ref(x_big, params, num_layers)
    assert out_big.shape == (200, 1), out_big.shape
    assert jnp.allclose(out_big, ref_big, atol=1e-4, rtol=1e-4), (
        out_big, ref_big)

    print("KERNEL_OK")
</pallas_src>

<mosaic_0001>
module attributes {stable_mosaic.version = 11 : i64} {
  func.func @_sum_pooling_kernel(%arg0: i32, %arg1: memref<16x3xf32, #tpu.memory_space<vmem>>, %arg2: memref<3x30xf32, #tpu.memory_space<vmem>>, %arg3: memref<1x30xf32, #tpu.memory_space<vmem>>, %arg4: memref<30x30xf32, #tpu.memory_space<vmem>>, %arg5: memref<1x30xf32, #tpu.memory_space<vmem>>, %arg6: memref<30x30xf32, #tpu.memory_space<vmem>>, %arg7: memref<1x30xf32, #tpu.memory_space<vmem>>, %arg8: memref<30x30xf32, #tpu.memory_space<vmem>>, %arg9: memref<1x30xf32, #tpu.memory_space<vmem>>, %arg10: memref<1x30xf32, #tpu.memory_space<vmem>>, %arg11: memref<1x1xf32, #tpu.memory_space<vmem>>, %arg12: memref<1x2xf32, #tpu.memory_space<vmem>>) attributes {dimension_semantics = [#tpu.dimension_semantics<parallel>], iteration_bounds = array<i64: 1>, scalar_prefetch = 0 : i64, scratch_operands = 0 : i64, tpu.core_type = #tpu.core_type<tc>, window_params = [{transform_indices = @transform_0, window_bounds = array<i64: 16, 3>}, {pipeline_mode = #tpu.pipeline_mode<synchronous>, transform_indices = @transform_1, window_bounds = array<i64: 3, 30>}, {pipeline_mode = #tpu.pipeline_mode<synchronous>, transform_indices = @transform_2, window_bounds = array<i64: 1, 30>}, {pipeline_mode = #tpu.pipeline_mode<synchronous>, transform_indices = @transform_3, window_bounds = array<i64: 30, 30>}, {pipeline_mode = #tpu.pipeline_mode<synchronous>, transform_indices = @transform_4, window_bounds = array<i64: 1, 30>}, {pipeline_mode = #tpu.pipeline_mode<synchronous>, transform_indices = @transform_5, window_bounds = array<i64: 30, 30>}, {pipeline_mode = #tpu.pipeline_mode<synchronous>, transform_indices = @transform_6, window_bounds = array<i64: 1, 30>}, {pipeline_mode = #tpu.pipeline_mode<synchronous>, transform_indices = @transform_7, window_bounds = array<i64: 30, 30>}, {pipeline_mode = #tpu.pipeline_mode<synchronous>, transform_indices = @transform_8, window_bounds = array<i64: 1, 30>}, {pipeline_mode = #tpu.pipeline_mode<synchronous>, transform_indices = @transform_9, window_bounds = array<i64: 1, 30>}, {pipeline_mode = #tpu.pipeline_mode<synchronous>, transform_indices = @transform_10, window_bounds = array<i64: 1, 1>}, {transform_indices = @transform_11, window_bounds = array<i64: 1, 2>}]} {
    %c0 = arith.constant 0 : index
    %c0_0 = arith.constant 0 : index
    %0 = vector.load %arg1[%c0, %c0_0] : memref<16x3xf32, #tpu.memory_space<vmem>>, vector<16x3xf32>
    %c0_1 = arith.constant 0 : index
    %c0_2 = arith.constant 0 : index
    %1 = vector.load %arg2[%c0_1, %c0_2] : memref<3x30xf32, #tpu.memory_space<vmem>>, vector<3x30xf32>
    %cst = arith.constant dense<0.000000e+00> : vector<16x30xf32>
    %2 = tpu.matmul %0, %1, %cst {dimension_numbers = #tpu.dot_dimension_numbers<[1], [0], [0], [1], [0, 0, 1, 1], [], []>} : vector<16x3xf32>, vector<3x30xf32>, vector<16x30xf32> -> vector<16x30xf32>
    %c0_3 = arith.constant 0 : index
    %c0_4 = arith.constant 0 : index
    %3 = vector.load %arg3[%c0_3, %c0_4] : memref<1x30xf32, #tpu.memory_space<vmem>>, vector<1x30xf32>
    %4 = vector.broadcast %3 : vector<1x30xf32> to vector<16x30xf32>
    %5 = arith.addf %2, %4 : vector<16x30xf32>
    %6 = math.tanh %5 : vector<16x30xf32>
    %7 = vector.shape_cast %6 : vector<16x30xf32> to vector<2x8x30xf32>
    %cst_5 = arith.constant dense<0.000000e+00> : vector<2x30xf32>
    %8 = vector.multi_reduction <add>, %7, %cst_5 [1] : vector<2x8x30xf32> to vector<2x30xf32>
    %c0_6 = arith.constant 0 : index
    %c0_7 = arith.constant 0 : index
    %9 = vector.load %arg4[%c0_6, %c0_7] : memref<30x30xf32, #tpu.memory_space<vmem>>, vector<30x30xf32>
    %c0_8 = arith.constant 0 : index
    %c0_9 = arith.constant 0 : index
    %10 = vector.load %arg5[%c0_8, %c0_9] : memref<1x30xf32, #tpu.memory_space<vmem>>, vector<1x30xf32>
    %cst_10 = arith.constant dense<0.000000e+00> : vector<2x30xf32>
    %11 = tpu.matmul %8, %9, %cst_10 {dimension_numbers = #tpu.dot_dimension_numbers<[1], [0], [0], [1], [0, 0, 1, 1], [], []>} : vector<2x30xf32>, vector<30x30xf32>, vector<2x30xf32> -> vector<2x30xf32>
    %12 = vector.broadcast %10 : vector<1x30xf32> to vector<2x30xf32>
    %13 = arith.addf %11, %12 : vector<2x30xf32>
    %14 = math.tanh %13 : vector<2x30xf32>
    %c0_11 = arith.constant 0 : index
    %c0_12 = arith.constant 0 : index
    %15 = vector.load %arg6[%c0_11, %c0_12] : memref<30x30xf32, #tpu.memory_space<vmem>>, vector<30x30xf32>
    %c0_13 = arith.constant 0 : index
    %c0_14 = arith.constant 0 : index
    %16 = vector.load %arg7[%c0_13, %c0_14] : memref<1x30xf32, #tpu.memory_space<vmem>>, vector<1x30xf32>
    %cst_15 = arith.constant dense<0.000000e+00> : vector<2x30xf32>
    %17 = tpu.matmul %14, %15, %cst_15 {dimension_numbers = #tpu.dot_dimension_numbers<[1], [0], [0], [1], [0, 0, 1, 1], [], []>} : vector<2x30xf32>, vector<30x30xf32>, vector<2x30xf32> -> vector<2x30xf32>
    %18 = vector.broadcast %16 : vector<1x30xf32> to vector<2x30xf32>
    %19 = arith.addf %17, %18 : vector<2x30xf32>
    %20 = math.tanh %19 : vector<2x30xf32>
    %c0_16 = arith.constant 0 : index
    %c0_17 = arith.constant 0 : index
    %21 = vector.load %arg8[%c0_16, %c0_17] : memref<30x30xf32, #tpu.memory_space<vmem>>, vector<30x30xf32>
    %c0_18 = arith.constant 0 : index
    %c0_19 = arith.constant 0 : index
    %22 = vector.load %arg9[%c0_18, %c0_19] : memref<1x30xf32, #tpu.memory_space<vmem>>, vector<1x30xf32>
    %cst_20 = arith.constant dense<0.000000e+00> : vector<2x30xf32>
    %23 = tpu.matmul %20, %21, %cst_20 {dimension_numbers = #tpu.dot_dimension_numbers<[1], [0], [0], [1], [0, 0, 1, 1], [], []>} : vector<2x30xf32>, vector<30x30xf32>, vector<2x30xf32> -> vector<2x30xf32>
    %24 = vector.broadcast %22 : vector<1x30xf32> to vector<2x30xf32>
    %25 = arith.addf %23, %24 : vector<2x30xf32>
    %26 = math.tanh %25 : vector<2x30xf32>
    %c0_21 = arith.constant 0 : index
    %c0_22 = arith.constant 0 : index
    %27 = vector.load %arg10[%c0_21, %c0_22] : memref<1x30xf32, #tpu.memory_space<vmem>>, vector<1x30xf32>
    "tpu.trace_start"() <{level = 10 : i32, message = "on,bn->ob"}> : () -> ()
    %cst_23 = arith.constant dense<0.000000e+00> : vector<1x2xf32>
    %28 = tpu.matmul %27, %26, %cst_23 {dimension_numbers = #tpu.dot_dimension_numbers<[1], [1], [0], [0], [0, 0, 1, 0], [], []>} : vector<1x30xf32>, vector<2x30xf32>, vector<1x2xf32> -> vector<1x2xf32>
    "tpu.trace_stop"() : () -> ()
    %c0_24 = arith.constant 0 : index
    %c0_25 = arith.constant 0 : index
    %29 = vector.load %arg11[%c0_24, %c0_25] : memref<1x1xf32, #tpu.memory_space<vmem>>, vector<1x1xf32>
    %30 = vector.broadcast %29 : vector<1x1xf32> to vector<1x2xf32>
    %31 = arith.addf %28, %30 : vector<1x2xf32>
    %c0_26 = arith.constant 0 : index
    %c0_27 = arith.constant 0 : index
    %32 = vector.load %arg12[%c0_26, %c0_27] : memref<1x2xf32, #tpu.memory_space<vmem>>, vector<1x2xf32>
    tpu.vector_store %arg12[%c0_26, %c0_27], %31 {strides = array<i32>} : memref<1x2xf32, #tpu.memory_space<vmem>>, vector<1x2xf32>,
    return
  }
  func.func @transform_0(%arg0: i32) -> (i32, i32) {
    %c0_i32 = arith.constant 0 : i32
    %c0_i32_0 = arith.constant 0 : i32
    return %arg0, %c0_i32 : i32, i32
  }
  func.func @transform_1(%arg0: i32) -> (i32, i32) {
    %c0_i32 = arith.constant 0 : i32
    %c0_i32_0 = arith.constant 0 : i32
    %c0_i32_1 = arith.constant 0 : i32
    return %c0_i32, %c0_i32_0 : i32, i32
  }
  func.func @transform_2(%arg0: i32) -> (i32, i32) {
    %c0_i32 = arith.constant 0 : i32
    %c0_i32_0 = arith.constant 0 : i32
    %c0_i32_1 = arith.constant 0 : i32
    return %c0_i32, %c0_i32_0 : i32, i32
  }
  func.func @transform_3(%arg0: i32) -> (i32, i32) {
    %c0_i32 = arith.constant 0 : i32
    %c0_i32_0 = arith.constant 0 : i32
    %c0_i32_1 = arith.constant 0 : i32
    return %c0_i32, %c0_i32_0 : i32, i32
  }
  func.func @transform_4(%arg0: i32) -> (i32, i32) {
    %c0_i32 = arith.constant 0 : i32
    %c0_i32_0 = arith.constant 0 : i32
    %c0_i32_1 = arith.constant 0 : i32
    return %c0_i32, %c0_i32_0 : i32, i32
  }
  func.func @transform_5(%arg0: i32) -> (i32, i32) {
    %c0_i32 = arith.constant 0 : i32
    %c0_i32_0 = arith.constant 0 : i32
    %c0_i32_1 = arith.constant 0 : i32
    return %c0_i32, %c0_i32_0 : i32, i32
  }
  func.func @transform_6(%arg0: i32) -> (i32, i32) {
    %c0_i32 = arith.constant 0 : i32
    %c0_i32_0 = arith.constant 0 : i32
    %c0_i32_1 = arith.constant 0 : i32
    return %c0_i32, %c0_i32_0 : i32, i32
  }
  func.func @transform_7(%arg0: i32) -> (i32, i32) {
    %c0_i32 = arith.constant 0 : i32
    %c0_i32_0 = arith.constant 0 : i32
    %c0_i32_1 = arith.constant 0 : i32
    return %c0_i32, %c0_i32_0 : i32, i32
  }
  func.func @transform_8(%arg0: i32) -> (i32, i32) {
    %c0_i32 = arith.constant 0 : i32
    %c0_i32_0 = arith.constant 0 : i32
    %c0_i32_1 = arith.constant 0 : i32
    return %c0_i32, %c0_i32_0 : i32, i32
  }
  func.func @transform_9(%arg0: i32) -> (i32, i32) {
    %c0_i32 = arith.constant 0 : i32
    %c0_i32_0 = arith.constant 0 : i32
    %c0_i32_1 = arith.constant 0 : i32
    return %c0_i32, %c0_i32_0 : i32, i32
  }
  func.func @transform_10(%arg0: i32) -> (i32, i32) {
    %c0_i32 = arith.constant 0 : i32
    %c0_i32_0 = arith.constant 0 : i32
    %c0_i32_1 = arith.constant 0 : i32
    return %c0_i32, %c0_i32_0 : i32, i32
  }
  func.func @transform_11(%arg0: i32) -> (i32, i32) {
    %c0_i32 = arith.constant 0 : i32
    %c0_i32_0 = arith.constant 0 : i32
    return %c0_i32, %arg0 : i32, i32
  }
}

</mosaic_0001>

<bundles_post_ra>
// kernel: tpu_custom_call.1
= control target key start
LH: loop header
LB: loop body
LE: loop exit
PB: predicated region body
PF: predicated region fallthrough
CT: control target
= control target key end

     0   :  { %s935_s0 = inlined_call_operand.vmem [shape: f32[16,3], index: 0, kind: input, shape index: {}]   ;;  %s936_s1 = inlined_call_operand.hbm [shape: f32[3,30], index: 1, kind: input, shape index: {}]   ;;  %s937_s2 = inlined_call_operand.vmem [shape: f32[1,30], index: 2, kind: input, shape index: {}]   ;;  %s938_s3 = inlined_call_operand.hbm [shape: f32[30,30], index: 3, kind: input, shape index: {}]   ;;  %s939_s4 = inlined_call_operand.vmem [shape: f32[1,30], index: 4, kind: input, shape index: {}]   ;;  %s940_s5 = inlined_call_operand.hbm [shape: f32[30,30], index: 5, kind: input, shape index: {}]   ;;  %s941_s6 = inlined_call_operand.hbm [shape: f32[1,30], index: 6, kind: input, shape index: {}]   ;;  %s942_s7 = inlined_call_operand.vmem [shape: f32[30,30], index: 7, kind: input, shape index: {}]   ;;  %s943_s8 = inlined_call_operand.vmem [shape: f32[1,30], index: 8, kind: input, shape index: {}]   ;;  %s944_s9 = inlined_call_operand.vmem [shape: f32[1,30], index: 9, kind: input, shape index: {}]   ;;  %s945_s10 = inlined_call_operand.<no memory space> [shape: f32[1,1], index: 10, kind: input, shape index: {}]   ;;  %s946_s11 = inlined_call_operand.hbm [shape: f32[1,2], index: 11, kind: output, shape index: {}]  }
   0x1   :  { %v16_v0 = vstv %s945_s10 }
   0x2   :  { %17 = vst [vmem:[#allocation2] sm:$0x1] %v16_v0 }
   0x3   :  { %18 = vsyncpa [#allocation4], 0 }
   0x4   :  { %19 = vsyncpa [#allocation7], 0 }
   0x5   :  { %20 = vsyncpa [#allocation10], 0 }
   0x6   :  { %21 = vsyncpa [#allocation5], 0  ;;  %s786_s19 = smov [#allocation6]  }
   0x7   :  { %s41_s20 = sshll.u32 %s786_s19, 4  ;;  %s42_s20 = int_to_ptr.vmem [resolvable:$true] %s41_s20 }
   0x8   :  { %s686_s21 = scalar_lea.vmem %s42_s20, 512  ;;  %p691_p1 = scmp.lt.s32.totalorder %s42_s20, %s42_s20 }
   0x9   :  { %p687_p0 = scmp.ne.s32.totalorder %s42_s20, %s686_s21  ;;  %p692_p2 = scmp.lt.s32.totalorder %s686_s21, %s686_s21 }
   0xb   :  { %p693_p3 = por %p692_p2, %p691_p1 }
   0xd   :  { %p694_p4 = pnand %p693_p3, %p687_p0 }
   0xf   :  { %697 = shalt.err (!%p694_p4)
}
  0x10   :  { %s787_s22 = smov 128   ;;  %s788_s23 = smov 8  }
  0x11   :  { %47 = dma.hbm_to_vmem [thread:$0]  %s938_s3, 512, %s42_s20, [#allocation7], %s787_s22, %s787_s22, %s788_s23  }
  0x12   :  { %s789_s10 = smov [#allocation3]   ;;  %s790_s27 = smov [#allocation8]  }
  0x13   :  { %s30_s26 = sshll.u32 %s789_s10, 4  ;;  %s55_s28 = sshll.u32 %s790_s27, 4  ;;  %s31_s26 = int_to_ptr.vmem [resolvable:$true] %s30_s26  ;;  %s56_s28 = int_to_ptr.vmem [resolvable:$true] %s55_s28 }
  0x14   :  { %s706_s29 = scalar_lea.vmem %s31_s26, 64  ;;  %p711_p6 = scmp.lt.s32.totalorder %s31_s26, %s31_s26 }
  0x15   :  { %p707_p5 = scmp.ne.s32.totalorder %s31_s26, %s706_s29  ;;  %p712_p7 = scmp.lt.s32.totalorder %s706_s29, %s706_s29 }
  0x17   :  { %p713_p8 = por %p712_p7, %p711_p6 }
  0x19   :  { %p714_p9 = pnand %p713_p8, %p707_p5 }
  0x1b   :  { %717 = shalt.err (!%p714_p9)
}
  0x1c   :  { %33 = dma.hbm_to_vmem [thread:$0]  %s936_s1, 64, %s31_s26, [#allocation4]  }
  0x1d   :  { %s726_s13 = scalar_lea.vmem %s56_s28, 512  ;;  %p731_p11 = scmp.lt.s32.totalorder %s56_s28, %s56_s28 }
  0x1e   :  { %p727_p10 = scmp.ne.s32.totalorder %s56_s28, %s726_s13  ;;  %p732_p12 = scmp.lt.s32.totalorder %s726_s13, %s726_s13 }
  0x20   :  { %p733_p13 = por %p732_p12, %p731_p11 }
  0x22   :  { %p734_p0 = pnand %p733_p13, %p727_p10 }
  0x24   :  { %737 = shalt.err (!%p734_p0)
}
  0x25   :  { %61 = dma.hbm_to_vmem [thread:$0]  %s940_s5, 512, %s56_s28, [#allocation7], %s787_s22, %s787_s22, %s788_s23  }
  0x26   :  { %s791_s15 = smov [#allocation9]  }
  0x27   :  { %s68_s16 = sshll.u32 %s791_s15, 4  ;;  %s69_s16 = int_to_ptr.vmem [resolvable:$true] %s68_s16 }
  0x28   :  { %s746_s17 = scalar_lea.vmem %s69_s16, 16  ;;  %s750_s18 = scalar_lea.vmem %s69_s16, 32 }
  0x29   :  { %p747_p1 = scmp.ne.s32.totalorder %s69_s16, %s746_s17  ;;  %p751_p2 = scmp.lt.s32.totalorder %s69_s16, %s69_s16 }
  0x2a   :  { %p752_p3 = scmp.lt.s32.totalorder %s750_s18, %s746_s17 }
  0x2c   :  { %p753_p4 = por %p752_p3, %p751_p2 }
  0x2e   :  { %p754_p5 = pnand %p753_p4, %p747_p1 }
  0x30   :  { %757 = shalt.err (!%p754_p5)
}
  0x31   :  { %71 = dma.hbm_to_vmem [thread:$0]  %s941_s6, 16, %s69_s16, [#allocation10]  }
  0x32   :  { %778 = dma.done.wait [#allocation4], 64  }
  0x33   :  { %779 = vsyncadd [#allocation4], 4294967232 }
  0x34   :  { %780 = dma.done.wait [#allocation7], 1024  }
  0x35   :  { %781 = vsyncadd [#allocation7], 4294966272 }
  0x36   :  { %782 = dma.done.wait [#allocation10], 16  }
  0x37   :  { %783 = vsyncadd [#allocation10], 4294967280  ;;  %vm109_vm0 = vcmask 1042432   ;;  %vm102_vm1 = vcmask 23552   ;;  %v94_v1 = vld [vmem:[#allocation3] sm:$0x7]  ;;  %v480_v57 = vlaneseq }
  0x38   :  { %v92_v2 = vld [vmem:[%s935_s0] sm:$0xff]  ;;  %v93_v3 = vld [vmem:[%s935_s0 + $0x8] sm:$0xff]  ;;  %614 = vmatprep.subr.msk.mxu0 %vm109_vm0, %v94_v1  ;;  %vm222_vm2 = vcmask 1045504   ;;  %v792_v5 = vmov 0.0   ;;  %v207_v6 = vld [vmem:[#allocation6 + $0x10] sm:$0xff]  ;;  %vm793_vm3 = vmmov 0  }
  0x39   :  { %616 = vmatprep.mubr.msk.f32.mxu0 %vm102_vm1, %v92_v2  ;;  %615 = vmatpush3.msk.msra.mxu0 %vm109_vm0, %v94_v1  ;;  %v208_v4 = vld [vmem:[#allocation6 + $0x18] sm:$0x3f]  ;;  %v206_v7 = vld [vmem:[#allocation6 + $0x8] sm:$0xff]  ;;  %v205_v8 = vld [vmem:[#allocation6] sm:$0xff]  ;;  %vm190_vm4 = vcmask 244736   ;;  %vm218_vm5 = vcmask 1041409  }
  0x3a   :  { %617 = vmatmul.mubr.msk.f32.vlgmr.msra.gmra.mxu0 %vm102_vm1, %v93_v3  ;;  %619 = vmatprep.subr.mxu1 %v792_v5  ;;  %v579_v9 = vld [vmem:[%s937_s2] ss:$0 sm:$0xff]  ;;  %v299_v32 = vld [vmem:[#allocation8 + $0x10] sm:$0xff]  ;;  %v298_v33 = vld [vmem:[#allocation8 + $0x8] sm:$0xff]  ;;  %v794_v50 = vmov 0   ;;  %v481_v58 = vshrl.u32 %v480_v57, 7 }
  0x3b   :  { %630 = vmatprep.subr.mxu0 %v792_v5  ;;  %620 = vmatpush3.msk.msra.mxu1 %vm222_vm2, %v208_v4  ;;  %v300_v31 = vld [vmem:[#allocation8 + $0x18] sm:$0x3f]  ;;  %v297_v34 = vld [vmem:[#allocation8] sm:$0xff]  ;;  %v387_v41 = vld [vmem:[%s942_s7 + $0x10] sm:$0xff]  ;;  %s795_s3 = smov [#allocation11]   ;;  %vm560_vm6 = vcmask 8192  }
  0x3c   :  { %627 = vmatprep.mubr.msk.f32.mxu1 %vm793_vm3, %v792_v5  ;;  %621 = vmatprep.subr.mxu1 %v792_v5  ;;  %v583_v35 = vld [vmem:[%s939_s4] ss:$0 sm:$0xff]  ;;  %v388_v40 = vld [vmem:[%s942_s7 + $0x18] sm:$0x3f]  ;;  %v386_v42 = vld [vmem:[%s942_s7 + $0x8] sm:$0xff]  ;;  %v482_v59 = vsub.s32 0, %v481_v58 }
  0x3d   :  { %638 = vmatprep.mubr.msk.f32.mxu0 %vm793_vm3, %v792_v5  ;;  %622 = vmatpush3.msra.mxu1 %v207_v6  ;;  %v385_v43 = vld [vmem:[%s942_s7] sm:$0xff] }
  0x3e   :  { %623 = vmatprep.subr.mxu1 %v792_v5  ;;  %631 = vmatpush3.msk.msra.mxu0 %vm222_vm2, %v300_v31  ;;  %v586_v44 = vld [vmem:[#allocation9] ss:$0 sm:$0xff]  ;;  %v474_v49 = vld [vmem:[#allocation2] sm:$0x1] }
  0x3f   :  { %624 = vmatpush3.msra.mxu1 %v206_v7  ;;  %632 = vmatprep.subr.mxu0 %v792_v5  ;;  %v589_v51 = vld [vmem:[%s943_s8] ss:$0 sm:$0xff]  ;;  %s568_s8 = sshll.u32 %s795_s3, 4  ;;  %s569_s8 = int_to_ptr.vmem [resolvable:$true] %s568_s8 }
  0x40   :  { %625 = vmatprep.subr.mxu1 %v792_v5  ;;  %633 = vmatpush3.msra.mxu0 %v299_v32  ;;  %v473_v56 = vld [vmem:[%s944_s9] sm:$0x1]  ;;  %s758_s14 = scalar_lea.vmem %s569_s8, 16  ;;  %s762_s15 = scalar_lea.vmem %s569_s8, 32 }
  0x41   :  { %626 = vmatpush3.msra.mxu1 %v205_v8  ;;  %634 = vmatprep.subr.mxu0 %v792_v5  ;;  %p759_p6 = scmp.ne.s32.totalorder %s569_s8, %s758_s14  ;;  %p763_p7 = scmp.lt.s32.totalorder %s569_s8, %s569_s8 }
  0x42   :  { %641 = vmatprep.subr.mxu1 %v792_v5  ;;  %635 = vmatpush3.msra.mxu0 %v298_v33  ;;  %p764_p8 = scmp.lt.s32.totalorder %s762_s15, %s758_s14 }
  0x43   :  { %636 = vmatprep.subr.mxu0 %v792_v5  ;;  %667 = vset.pattern.permute.xlu0 %v794_v50 }
  0x44   :  { %637 = vmatpush3.msra.mxu0 %v297_v34  ;;  %477 = vperm.xlu0 %667, %v474_v49   ;;  %p765_p9 = por %p764_p8, %p763_p7 }
  0x45   :  { %652 = vmatprep.subr.mxu0 %v792_v5 }
  0x46   :  { %p766_p10 = pnand %p765_p9, %p759_p6 }
  0xbf   :  { %v478_v60 = vpop.permute.xlu0 %477 }
  0xc0   :  { %v483_v61 = vrot.slane %v478_v60, %v482_v59 }
  0xfa   :  { %v618_v10 = vpop.f32.mrf.mxu0 }
  0xfb   :  { %v185_v11 = vadd.f32 %v618_v10, %v579_v9 }
  0xfc   :  { %v179_v12 = vpop.f32.mrf.mxu0 }
  0xfd   :  { %668 = vtanh.f32 %v185_v11  ;;  %v180_v13 = vadd.f32 %v579_v9, %v179_v12 }
  0xff   :  { %670 = vtanh.f32 %v180_v13 }
 0x10a   :  { %v669_v14 = vpop.eup %668 }
 0x10b   :  { %v198_v15 = vsel %vm190_vm4, %v669_v14, 0.0 }
 0x10c   :  { %v671_v16 = vpop.eup %670  ;;  %v199_v17 = vrot.slane %v198_v15, 4 }
 0x10d   :  { %v191_v18 = vsel %vm190_vm4, %v671_v16, 0.0 }
 0x10e   :  { %v192_v19 = vrot.slane %v191_v18, 4  ;;  %v200_v20 = vadd.f32 %v199_v17, %v198_v15 }
 0x110   :  { %v193_v21 = vadd.f32 %v192_v19, %v191_v18  ;;  %v201_v22 = vrot.slane %v200_v20, 2 }
 0x112   :  { %v194_v23 = vrot.slane %v193_v21, 2  ;;  %v202_v24 = vadd.f32 %v201_v22, %v200_v20 }
 0x114   :  { %v195_v25 = vadd.f32 %v194_v23, %v193_v21  ;;  %v203_v26 = vrot.slane %v202_v24, 1 }
 0x116   :  { %v196_v27 = vrot.slane %v195_v25, 1  ;;  %v204_v29 = vadd.f32 %v203_v26, %v202_v24 }
 0x118   :  { %v197_v28 = vadd.f32 %v196_v27, %v195_v25 }
 0x11a   :  { %v219_v30 = vsel %vm218_vm5, %v204_v29, %v197_v28 }
 0x11b   :  { %628 = vmatmul.mubr.msk.f32.vlgmr.msra.gmra.mxu1 %vm190_vm4, %v219_v30 }
 0x11c   :  { %649 = vmatprep.mubr.msk.f32.mxu1 %vm793_vm3, %v792_v5  ;;  %642 = vmatpush3.msk.msra.mxu1 %vm222_vm2, %v388_v40 }
 0x11d   :  { %643 = vmatprep.subr.mxu1 %v792_v5 }
 0x11e   :  { %644 = vmatpush3.msra.mxu1 %v387_v41 }
 0x11f   :  { %645 = vmatprep.subr.mxu1 %v792_v5 }
 0x120   :  { %646 = vmatpush3.msra.mxu1 %v386_v42 }
 0x121   :  { %647 = vmatprep.subr.mxu1 %v792_v5 }
 0x122   :  { %648 = vmatpush3.msra.mxu1 %v385_v43 }
 0x1db   :  { %v292_v36 = vpop.f32.mrf.mxu1 }
 0x1dc   :  { %v293_v37 = vadd.f32 %v583_v35, %v292_v36 }
 0x1dd   :  { %v629_v38 = vpop.f32.mrf.mxu1 }
 0x1de   :  { %672 = vtanh.f32 %v293_v37 }
 0x1eb   :  { %v673_v39 = vpop.eup %672 }
 0x1ec   :  { %639 = vmatmul.mubr.msk.f32.vlgmr.msra.gmra.mxu0 %vm190_vm4, %v673_v39 }
 0x1ed   :  { %654 = vmatprep.mubr.msk.f32.mxu0 %vm793_vm3, %v792_v5 }
 0x2ac   :  { %v380_v45 = vpop.f32.mrf.mxu0 }
 0x2ad   :  { %v381_v46 = vadd.f32 %v586_v44, %v380_v45 }
 0x2ae   :  { %v640_v47 = vpop.f32.mrf.mxu0 }
 0x2af   :  { %674 = vtanh.f32 %v381_v46 }
 0x2bc   :  { %v675_v48 = vpop.eup %674 }
 0x2bd   :  { %650 = vmatmul.mubr.msk.f32.vlgmr.msra.gmra.mxu1 %vm190_vm4, %v675_v48 }
 0x37d   :  { %v468_v52 = vpop.f32.mrf.mxu1 }
 0x37e   :  { %v469_v53 = vadd.f32 %v589_v51, %v468_v52 }
 0x37f   :  { %v651_v54 = vpop.f32.mrf.mxu1 }
 0x380   :  { %676 = vtanh.f32 %v469_v53 }
 0x38d   :  { %v677_v55 = vpop.eup %676 }
 0x38e   :  { %653 = vmatpush3.xpose.msk.msra.mxu0 %vm190_vm4, %v677_v55 }
 0x391   :  { %655 = vmatmul.mubr.msk.f32.vlgmr.msra.gmra.mxu0 %vm190_vm4, %v473_v56 }
 0x451   :  { %v556_v62 = vpop.f32.mrf.mxu0 }
 0x452   :  { %v557_v63 = vadd.f32 %v556_v62, %v483_v61 }
 0x453   :  { %v656_v0 = vpop.f32.mrf.mxu0 }
 0x454   :  { %561 = vst.msk [vmem:[#allocation11] sm:$0x1] %vm560_vm6, %v557_v63 }
 0x455   :  { %769 = shalt.err (!%p766_p10)
}
 0x456   :  { %571 = dma.vmem_to_hbm [thread:$0]  %s569_s8, 16, %s946_s11, [#allocation5]  }
 0x457   :  { %784 = dma.done.wait [#allocation5], 16  }
 0x458   :  { %785 = vsyncadd [#allocation5], 4294967280 }
 0x459   :  { %575 = vsyncpa [#allocation4], 1 }
 0x45a   :  { %576 = vsyncpa [#allocation7], 1 }
 0x45b   :  { %577 = vsyncpa [#allocation10], 1 }
 0x45c   :  { %578 = vsyncpa [#allocation5], 1 }

</bundles_post_ra>
